<compile_context>
chip_gen: v6e
topology: v6e:2x2x1
jax: 0.10.0
libtpu: 0.0.40
codegen_flags: <defaults>
</compile_context>

<pallas_src>
import jax
import jax.numpy as jnp
from jax.experimental import pallas as pl
from jax.experimental.pallas import tpu as pltpu

PRED_MLP_HIDDEN = 100        # JointModel.pred_mlp_hidden_size
PRED_MLP_HIDDEN_PAD = 128    # padded to a full lane tile
RNN_HIDDEN = 100             # JointModel.rnn_hidden_size
RNN_HIDDEN_PAD = 128         # padded to a full lane tile
LABEL_PAD = 128              # lane-dense output (num_labels padded)


def _round_up(x, m):
    return ((x + m - 1) // m) * m


def _vmem_spec():
    # All operands are tiny; keep whole arrays resident in VMEM (full-array blocks).
    return pl.BlockSpec(memory_space=pltpu.MemorySpace.VMEM)


# --------------------------------------------------------------------------
# concat_visits=True path:
#   predictor = Linear(Q*E, 100) -> ReLU -> Dropout(0.25) -> Linear(100, num_labels)
# --------------------------------------------------------------------------
def _mlp_pred_kernel(x_ref, w1_ref, b1_ref, w2_ref, b2_ref, prob_ref):
    h = jnp.dot(x_ref[...], w1_ref[...], preferred_element_type=jnp.float32) + b1_ref[...]
    h = jnp.maximum(h, 0.0)                      # ReLU (Dropout is identity in eval)
    logits = jnp.dot(h, w2_ref[...], preferred_element_type=jnp.float32) + b2_ref[...]
    prob_ref[...] = jax.nn.sigmoid(logits)       # experiment=True -> sigmoid(logit)


def predictor_mlp(pred_state, mlp_params, num_labels):
    w1, b1, w2, b2 = mlp_params
    B, _ = pred_state.shape
    Bp = _round_up(max(B, 8), 8)
    Hp, Lp = PRED_MLP_HIDDEN_PAD, LABEL_PAD
    # Zero-pad hidden (100 -> 128) and labels (1 -> 128): lane-dense compute & store.
    w1p = jnp.pad(w1, ((0, 0), (0, Hp - w1.shape[1])))
    b1p = jnp.pad(b1, ((0, 0), (0, Hp - b1.shape[1])))
    w2p = jnp.pad(w2, ((0, Hp - w2.shape[0]), (0, Lp - w2.shape[1])))
    b2p = jnp.pad(b2, ((0, 0), (0, Lp - b2.shape[1])))
    x = jnp.pad(pred_state, ((0, Bp - B), (0, 0)))
    out = pl.pallas_call(
        _mlp_pred_kernel,
        out_shape=jax.ShapeDtypeStruct((Bp, Lp), jnp.float32),
        in_specs=[_vmem_spec()] * 5,
        out_specs=_vmem_spec(),
    )(x, w1p, b1p, w2p, b2p)
    return out[:B, :num_labels]


# --------------------------------------------------------------------------
# concat_visits=False path:
#   GRU(input=E, hidden=100, batch_first) over a pack_padded_sequence, take the
#   final hidden state, then pred_layer = Dropout -> ReLU -> Linear(100, num_labels)
# --------------------------------------------------------------------------
def _gru_pred_kernel(xflat_ref, lens_ref, wx_ref, whp_ref, bias_ref, prob_ref):
    Bp = lens_ref.shape[0]
    Hp = whp_ref.shape[0]
    H3 = 3 * Hp
    T = xflat_ref.shape[0] // Bp

    bias = bias_ref[...]                         # (2, 3Hp + Lp), loaded once
    b_x = bias[0:1, :H3]                         # [b_ir+b_hr | b_iz+b_hz | b_in]
    b_rec = bias[1:2, :H3]                       # [0 | 0 | b_hn]  (stays inside r*(...))
    b_p = bias[0:1, H3:]                         # prediction-head bias

    w_h = whp_ref[:, :H3]                        # (Hp, 3Hp) fused recurrent weights
    w_p = whp_ref[:, H3:]                        # (Hp, Lp)  prediction-head weights

    # Hoisted fused input projection: ONE matmul covers every timestep and gate.
    xp = jnp.dot(xflat_ref[...], wx_ref[...],
                 preferred_element_type=jnp.float32) + b_x      # (T*Bp, 3Hp)

    lens = lens_ref[...]                         # (Bp, 1) int32, loaded once (hoisted)
    h = jnp.zeros((Bp, Hp), jnp.float32)         # h_0 = 0 (PyTorch default); padded lanes stay 0

    for t in range(T):                           # static unroll: T is small & fixed
        xp_t = xp[t * Bp:(t + 1) * Bp, :]        # sublane-aligned static slice (Bp rows)
        gh = jnp.dot(h, w_h, preferred_element_type=jnp.float32) + b_rec   # 1 matmul/step
        r = jax.nn.sigmoid(xp_t[:, :Hp] + gh[:, :Hp])
        z = jax.nn.sigmoid(xp_t[:, Hp:2 * Hp] + gh[:, Hp:2 * Hp])
        n = jnp.tanh(xp_t[:, 2 * Hp:] + r * gh[:, 2 * Hp:])
        h_new = (1.0 - z) * n + z * h
        # pack_padded_sequence semantics: state only advances while t < length[b],
        # so after the loop h equals the GRU "final hidden" at t = length[b].
        h = jnp.where(t < lens, h_new, h)

    h = jnp.maximum(h, 0.0)                      # pred_layer: Dropout(identity) -> ReLU
    logits = jnp.dot(h, w_p, preferred_element_type=jnp.float32) + b_p
    prob_ref[...] = jax.nn.sigmoid(logits)       # experiment=True -> sigmoid(logit)


def _pack_gru_params(gru, wp, bp, Hp, Lp):
    """Pack the 14 per-gate GRU params + prediction head into 3 padded slabs."""
    (wir, wiz, win, whr, whz, whn, bir, biz, bin_, bhr, bhz, bhn) = gru
    _, H = wir.shape

    def pad_cols(a, width):
        return jnp.pad(a, ((0, 0), (0, width - a.shape[1])))

    # Fused input-projection weights (E, 3*Hp), gate order [r | z | n].
    wx = jnp.concatenate([pad_cols(wir, Hp), pad_cols(wiz, Hp), pad_cols(win, Hp)], axis=1)
    # Fused recurrent weights + prediction head: (Hp, 3*Hp + Lp) = [Whr|Whz|Whn|Wp].
    wh = jnp.concatenate([pad_cols(whr, Hp), pad_cols(whz, Hp), pad_cols(whn, Hp),
                          pad_cols(wp, Lp)], axis=1)
    whp = jnp.pad(wh, ((0, Hp - H), (0, 0)))
    # Bias slab (2, 3*Hp + Lp):
    #   row 0 = [b_ir+b_hr | b_iz+b_hz | b_in | b_p]  (merged; added in hoisted proj / head)
    #   row 1 = [   0      |     0     | b_hn |  0 ]  (added to h@Wh each step)
    row0 = jnp.concatenate([pad_cols(bir + bhr, Hp), pad_cols(biz + bhz, Hp),
                            pad_cols(bin_, Hp), pad_cols(bp, Lp)], axis=1)
    row1 = jnp.concatenate([jnp.zeros((1, 2 * Hp), jnp.float32), pad_cols(bhn, Hp),
                            jnp.zeros((1, Lp), jnp.float32)], axis=1)
    bias = jnp.concatenate([row0, row1], axis=0)
    return wx, whp, bias


def predictor_gru(rnn_input, lengths, gru_params, wp, bp, num_labels):
    # rnn_input: (B, T, E) batch-first (as in the PyTorch module); lengths: (B,) int
    B, T, E = rnn_input.shape
    Hp, Lp = RNN_HIDDEN_PAD, LABEL_PAD
    Bp = _round_up(max(B, 8), 8)                 # full sublane tile; padded rows masked out

    wx, whp, bias = _pack_gru_params(gru_params, wp, bp, Hp, Lp)

    x_tm = jnp.transpose(rnn_input, (1, 0, 2))               # (T, B, E) time-major
    x_tm = jnp.pad(x_tm, ((0, 0), (0, Bp - B), (0, 0)))      # pad batch rows with zeros
    x_flat = x_tm.reshape(T * Bp, E)                         # rows grouped per timestep
    lens = jnp.pad(lengths.astype(jnp.int32), (0, Bp - B)).reshape(Bp, 1)

    out = pl.pallas_call(
        _gru_pred_kernel,
        out_shape=jax.ShapeDtypeStruct((Bp, Lp), jnp.float32),
        in_specs=[_vmem_spec()] * 5,
        out_specs=_vmem_spec(),
    )(x_flat, lens, wx, whp, bias)
    return out[:B, :num_labels]


# --------------------------------------------------------------------------
# Parameter construction (deterministic, PyTorch-style uniform(+-1/sqrt(fan_in)))
# --------------------------------------------------------------------------
def _uniform(key, shape, fan_in):
    bound = 1.0 / jnp.sqrt(jnp.float32(fan_in))
    return jax.random.uniform(key, shape, jnp.float32, -bound, bound)


def make_params(key, encoding_size, num_input_qids, num_labels):
    ks = jax.random.split(key, 20)
    in_mlp = num_input_qids * encoding_size
    # predictor MLP
    w1 = _uniform(ks[0], (in_mlp, PRED_MLP_HIDDEN), in_mlp)
    b1 = _uniform(ks[1], (1, PRED_MLP_HIDDEN), in_mlp)
    w2 = _uniform(ks[2], (PRED_MLP_HIDDEN, num_labels), PRED_MLP_HIDDEN)
    b2 = _uniform(ks[3], (1, num_labels), PRED_MLP_HIDDEN)
    # GRU (per-gate matrices r, z, n), stored [in, out]
    E, H = encoding_size, RNN_HIDDEN
    wir = _uniform(ks[4], (E, H), H)
    wiz = _uniform(ks[5], (E, H), H)
    win = _uniform(ks[6], (E, H), H)
    whr = _uniform(ks[7], (H, H), H)
    whz = _uniform(ks[8], (H, H), H)
    whn = _uniform(ks[9], (H, H), H)
    bir = _uniform(ks[10], (1, H), H)
    biz = _uniform(ks[11], (1, H), H)
    bin_ = _uniform(ks[12], (1, H), H)
    bhr = _uniform(ks[13], (1, H), H)
    bhz = _uniform(ks[14], (1, H), H)
    bhn = _uniform(ks[15], (1, H), H)
    # pred_layer linear
    wp = _uniform(ks[16], (RNN_HIDDEN, num_labels), RNN_HIDDEN)
    bp = _uniform(ks[17], (1, num_labels), RNN_HIDDEN)
    gru = (wir, wiz, win, whr, whz, whn, bir, biz, bin_, bhr, bhz, bhn)
    return (w1, b1, w2, b2), gru, (wp, bp)


# --------------------------------------------------------------------------
# Pure-JAX references (for correctness checks of the kernels)
# --------------------------------------------------------------------------
def _ref_mlp(pred_state, mlp, num_labels):
    w1, b1, w2, b2 = mlp
    h = jnp.maximum(pred_state @ w1 + b1, 0.0)
    return jax.nn.sigmoid(h @ w2 + b2)[:, :num_labels]


def _ref_gru(rnn_input, lengths, gru, wp, bp, num_labels):
    (wir, wiz, win, whr, whz, whn, bir, biz, bin_, bhr, bhz, bhn) = gru
    B, T, _ = rnn_input.shape
    h = jnp.zeros((B, RNN_HIDDEN), jnp.float32)
    for t in range(T):
        x_t = rnn_input[:, t, :]
        r = jax.nn.sigmoid(x_t @ wir + bir + h @ whr + bhr)
        z = jax.nn.sigmoid(x_t @ wiz + biz + h @ whz + bhz)
        n = jnp.tanh(x_t @ win + bin_ + r * (h @ whn + bhn))
        h_new = (1.0 - z) * n + z * h
        h = jnp.where((t < lengths)[:, None], h_new, h)
    logits = jnp.maximum(h, 0.0) @ wp + bp
    return jax.nn.sigmoid(logits)[:, :num_labels]


if __name__ == "__main__":
    key = jax.random.PRNGKey(0)

    # Small shapes consistent with the module
    B = 2                       # batch_size = len(batch['sequence_lengths'])
    hidden_size = 16
    E = 2 * hidden_size         # encoding_size = hidden_size * 2  -> 32
    T = 8                       # max_seq_len == num_input_qids
    num_labels = 1
    seq_lengths = jnp.array([8, 5], dtype=jnp.int32)

    (w1, b1, w2, b2), gru_params, (wp, bp) = make_params(key, E, T, num_labels)

    # --- encoder + scatter (plain-JAX glue) ---------------------------------
    # all_encodings[target_idxs] = encoder(sub_batch)
    # TODO(synk): RNNModel encoder undefined in provided source; synthesize encodings.
    target_idxs = jnp.concatenate(
        [b * T + jnp.arange(int(l)) for b, l in enumerate(list(seq_lengths))]
    ).astype(jnp.int32)
    enc_key = jax.random.fold_in(key, 123)
    encodings = jax.random.normal(enc_key, (target_idxs.shape[0], E), jnp.float32)
    all_encodings = jnp.zeros((B * T, E), jnp.float32).at[target_idxs].set(encodings)

    # --- concat_visits=True: predictor MLP kernel ---------------------------
    pred_state = all_encodings.reshape(B, T * E)                        # (2, 256)
    probs_concat = predictor_mlp(pred_state, (w1, b1, w2, b2), num_labels).reshape(-1)

    # --- concat_visits=False: GRU + pred_layer kernel -----------------------
    rnn_input = all_encodings.reshape(B, T, E)                          # (B, T, E)
    probs_gru = predictor_gru(rnn_input, seq_lengths, gru_params, wp, bp,
                              num_labels).reshape(-1)

    jax.block_until_ready((probs_concat, probs_gru))
    assert probs_concat.shape == (B,) and probs_gru.shape == (B,)

    # Correctness check against a pure-JAX reference of the same forward pass.
    ref_concat = _ref_mlp(pred_state, (w1, b1, w2, b2), num_labels).reshape(-1)
    ref_gru = _ref_gru(rnn_input, seq_lengths, gru_params, wp, bp, num_labels).reshape(-1)
    assert bool(jnp.allclose(probs_concat, ref_concat, atol=1e-2, rtol=1e-2))
    assert bool(jnp.allclose(probs_gru, ref_gru, atol=1e-2, rtol=1e-2))

    print("KERNEL_OK")
</pallas_src>

<mosaic_0001>
module attributes {stable_mosaic.version = 11 : i64} {
  func.func @_mlp_pred_kernel(%arg0: memref<8x256xf32, #tpu.memory_space<vmem>>, %arg1: memref<256x128xf32, #tpu.memory_space<vmem>>, %arg2: memref<1x128xf32, #tpu.memory_space<vmem>>, %arg3: memref<128x128xf32, #tpu.memory_space<vmem>>, %arg4: memref<1x128xf32, #tpu.memory_space<vmem>>, %arg5: memref<8x128xf32, #tpu.memory_space<vmem>>) attributes {dimension_semantics = [], scalar_prefetch = 0 : i64, scratch_operands = 0 : i64, tpu.core_type = #tpu.core_type<tc>} {
    %c0 = arith.constant 0 : index
    %c0_0 = arith.constant 0 : index
    %0 = vector.load %arg0[%c0, %c0_0] : memref<8x256xf32, #tpu.memory_space<vmem>>, vector<8x256xf32>
    %c0_1 = arith.constant 0 : index
    %c0_2 = arith.constant 0 : index
    %1 = vector.load %arg1[%c0_1, %c0_2] : memref<256x128xf32, #tpu.memory_space<vmem>>, vector<256x128xf32>
    %cst = arith.constant dense<0.000000e+00> : vector<8x128xf32>
    %2 = tpu.matmul %0, %1, %cst {dimension_numbers = #tpu.dot_dimension_numbers<[1], [0], [0], [1], [0, 0, 1, 1], [], []>} : vector<8x256xf32>, vector<256x128xf32>, vector<8x128xf32> -> vector<8x128xf32>
    %c0_3 = arith.constant 0 : index
    %c0_4 = arith.constant 0 : index
    %3 = vector.load %arg2[%c0_3, %c0_4] : memref<1x128xf32, #tpu.memory_space<vmem>>, vector<1x128xf32>
    %4 = vector.broadcast %3 : vector<1x128xf32> to vector<8x128xf32>
    %5 = arith.addf %2, %4 : vector<8x128xf32>
    %cst_5 = arith.constant 0.000000e+00 : f32
    %6 = vector.broadcast %cst_5 : f32 to vector<8x128xf32>
    %7 = arith.maximumf %5, %6 : vector<8x128xf32>
    %c0_6 = arith.constant 0 : index
    %c0_7 = arith.constant 0 : index
    %8 = vector.load %arg3[%c0_6, %c0_7] : memref<128x128xf32, #tpu.memory_space<vmem>>, vector<128x128xf32>
    %cst_8 = arith.constant dense<0.000000e+00> : vector<8x128xf32>
    %9 = tpu.matmul %7, %8, %cst_8 {dimension_numbers = #tpu.dot_dimension_numbers<[1], [0], [0], [1], [0, 0, 1, 1], [], []>} : vector<8x128xf32>, vector<128x128xf32>, vector<8x128xf32> -> vector<8x128xf32>
    %c0_9 = arith.constant 0 : index
    %c0_10 = arith.constant 0 : index
    %10 = vector.load %arg4[%c0_9, %c0_10] : memref<1x128xf32, #tpu.memory_space<vmem>>, vector<1x128xf32>
    %11 = vector.broadcast %10 : vector<1x128xf32> to vector<8x128xf32>
    %12 = arith.addf %9, %11 : vector<8x128xf32>
    %13 = arith.negf %12 : vector<8x128xf32>
    %14 = math.exp %13 : vector<8x128xf32>
    %cst_11 = arith.constant 1.000000e+00 : f32
    %15 = vector.broadcast %cst_11 : f32 to vector<8x128xf32>
    %16 = arith.addf %15, %14 : vector<8x128xf32>
    %17 = arith.divf %15, %16 : vector<8x128xf32>
    %c0_12 = arith.constant 0 : index
    %c0_13 = arith.constant 0 : index
    %18 = vector.load %arg5[%c0_12, %c0_13] : memref<8x128xf32, #tpu.memory_space<vmem>>, vector<8x128xf32>
    tpu.vector_store %arg5[%c0_12, %c0_13], %17 {strides = array<i32>} : memref<8x128xf32, #tpu.memory_space<vmem>>, vector<8x128xf32>,
    return
  }
}

</mosaic_0001>

<bundles_post_ra>
// kernel: tpu_custom_call.1
= control target key start
LH: loop header
LB: loop body
LE: loop exit
PB: predicated region body
PF: predicated region fallthrough
CT: control target
= control target key end

     0   :  { %10 = vsyncpa [#allocation3], 0  ;;  %s549_s0 = inlined_call_operand.hbm [shape: f32[8,256], index: 0, kind: input, shape index: {}]   ;;  %s550_s1 = inlined_call_operand.hbm [shape: f32[256,128], index: 1, kind: input, shape index: {}]   ;;  %s551_s2 = inlined_call_operand.vmem [shape: f32[1,128], index: 2, kind: input, shape index: {}]   ;;  %s552_s3 = inlined_call_operand.hbm [shape: f32[128,128], index: 3, kind: input, shape index: {}]   ;;  %s553_s4 = inlined_call_operand.vmem [shape: f32[1,128], index: 4, kind: input, shape index: {}]   ;;  %s554_s5 = inlined_call_operand.hbm [shape: f32[8,128], index: 5, kind: output, shape index: {}]  }
   0x1   :  { %11 = vsyncpa [#allocation6], 0 }
   0x2   :  { %12 = vsyncpa [#allocation4], 0  ;;  %s476_s18 = smov [#allocation5]  }
   0x3   :  { %s28_s19 = sshll.u32 %s476_s18, 4  ;;  %s29_s19 = int_to_ptr.vmem [resolvable:$true] %s28_s19 }
   0x4   :  { %s398_s20 = scalar_lea.vmem %s29_s19, 4096  ;;  %p403_p1 = scmp.lt.s32.totalorder %s29_s19, %s29_s19 }
   0x5   :  { %p399_p0 = scmp.ne.s32.totalorder %s29_s19, %s398_s20  ;;  %p404_p2 = scmp.lt.s32.totalorder %s398_s20, %s398_s20 }
   0x7   :  { %p405_p3 = por %p404_p2, %p403_p1 }
   0x9   :  { %p406_p4 = pnand %p405_p3, %p399_p0 }
   0xb   :  { %409 = shalt.err (!%p406_p4)
}
   0xc   :  { %s477_s21 = smov 128   ;;  %s478_s22 = smov 8  }
   0xd   :  { %34 = dma.hbm_to_vmem [thread:$0]  %s550_s1, 4096, %s29_s19, [#allocation6], %s477_s21, %s477_s21, %s478_s22  }
   0xe   :  { %s479_s25 = smov [#allocation2]   ;;  %s480_s27 = smov [#allocation7]  }
   0xf   :  { %s19_s26 = sshll.u32 %s479_s25, 4  ;;  %s42_s28 = sshll.u32 %s480_s27, 4  ;;  %s20_s26 = int_to_ptr.vmem [resolvable:$true] %s19_s26  ;;  %s43_s28 = int_to_ptr.vmem [resolvable:$true] %s42_s28 }
  0x10   :  { %s418_s29 = scalar_lea.vmem %s20_s26, 256  ;;  %p423_p6 = scmp.lt.s32.totalorder %s20_s26, %s20_s26 }
  0x11   :  { %p419_p5 = scmp.ne.s32.totalorder %s20_s26, %s418_s29  ;;  %p424_p7 = scmp.lt.s32.totalorder %s418_s29, %s418_s29 }
  0x13   :  { %p425_p8 = por %p424_p7, %p423_p6 }
  0x15   :  { %p426_p9 = pnand %p425_p8, %p419_p5 }
  0x17   :  { %429 = shalt.err (!%p426_p9)
}
  0x18   :  { %22 = dma.hbm_to_vmem [thread:$0]  %s549_s0, 256, %s20_s26, [#allocation3]  }
  0x19   :  { %s438_s7 = scalar_lea.vmem %s43_s28, 2048  ;;  %p443_p11 = scmp.lt.s32.totalorder %s43_s28, %s43_s28 }
  0x1a   :  { %p439_p10 = scmp.ne.s32.totalorder %s43_s28, %s438_s7  ;;  %p444_p12 = scmp.lt.s32.totalorder %s438_s7, %s438_s7 }
  0x1c   :  { %p445_p13 = por %p444_p12, %p443_p11 }
  0x1e   :  { %p446_p0 = pnand %p445_p13, %p439_p10 }
  0x20   :  { %449 = shalt.err (!%p446_p0)
}
  0x21   :  { %48 = dma.hbm_to_vmem [thread:$0]  %s552_s3, 2048, %s43_s28, [#allocation6], %s477_s21, %s477_s21, %s478_s22  }
  0x22   :  { %470 = dma.done.wait [#allocation3], 256  }
  0x23   :  { %471 = vsyncadd [#allocation3], 4294967040 }
  0x24   :  { %472 = dma.done.wait [#allocation6], 6144  }
  0x25   :  { %473 = vsyncadd [#allocation6], 4294961152  ;;  %v481_v0 = vmov 0.0   ;;  %v93_v1 = vld [vmem:[#allocation5 + $0xf8] sm:$0xff]  ;;  %v92_v3 = vld [vmem:[#allocation5 + $0xf0] sm:$0xff]  ;;  %vm482_vm0 = vmmov 0  }
  0x26   :  { %343 = vmatprep.subr.mxu1 %v481_v0  ;;  %v77_v2 = vld [vmem:[#allocation5 + $0x78] sm:$0xff]  ;;  %291 = vmatprep.subr.mxu0 %v93_v1  ;;  %v76_v4 = vld [vmem:[#allocation5 + $0x70] sm:$0xff]  ;;  %v91_v5 = vld [vmem:[#allocation5 + $0xe8] sm:$0xff]  ;;  %s483_s11 = smov [#allocation8]  }
  0x27   :  { %292 = vmatpush3.msra.mxu0 %v77_v2  ;;  %v75_v6 = vld [vmem:[#allocation5 + $0x68] sm:$0xff]  ;;  %v90_v7 = vld [vmem:[#allocation5 + $0xe0] sm:$0xff]  ;;  %v89_v9 = vld [vmem:[#allocation5 + $0xd8] sm:$0xff]  ;;  %375 = vmatprep.mubr.msk.f32.mxu1 %vm482_vm0, %v481_v0  ;;  %s278_s12 = sshll.u32 %s483_s11, 4  ;;  %s279_s12 = int_to_ptr.vmem [resolvable:$true] %s278_s12 }
  0x28   :  { %293 = vmatprep.subr.mxu0 %v92_v3  ;;  %v74_v8 = vld [vmem:[#allocation5 + $0x60] sm:$0xff]  ;;  %v73_v10 = vld [vmem:[#allocation5 + $0x58] sm:$0xff]  ;;  %v88_v11 = vld [vmem:[#allocation5 + $0xd0] sm:$0xff]  ;;  %p455_p2 = scmp.lt.s32.totalorder %s279_s12, %s279_s12 }
  0x29   :  { %294 = vmatpush3.msra.mxu0 %v76_v4  ;;  %v72_v12 = vld [vmem:[#allocation5 + $0x50] sm:$0xff]  ;;  %v87_v13 = vld [vmem:[#allocation5 + $0xc8] sm:$0xff]  ;;  %v61_v14 = vld [vmem:[#allocation2 + $0x8] sm:$0xff] }
  0x2a   :  { %295 = vmatprep.subr.mxu0 %v91_v5  ;;  %v71_v15 = vld [vmem:[#allocation5 + $0x48] sm:$0xff]  ;;  %165 = vmatprep.mubr.f32.mxu0 %v61_v14  ;;  %v187_v16 = vld [vmem:[#allocation7 + $0x78] sm:$0xff]  ;;  %v186_v17 = vld [vmem:[#allocation7 + $0x70] sm:$0xff] }
  0x2b   :  { %296 = vmatpush3.msra.mxu0 %v75_v6  ;;  %v86_v18 = vld [vmem:[#allocation5 + $0xc0] sm:$0xff]  ;;  %344 = vmatpush3.msra.mxu1 %v187_v16  ;;  %v185_v20 = vld [vmem:[#allocation7 + $0x68] sm:$0xff]  ;;  %v85_v21 = vld [vmem:[#allocation5 + $0xb8] sm:$0xff] }
  0x2c   :  { %297 = vmatprep.subr.mxu0 %v90_v7  ;;  %v70_v19 = vld [vmem:[#allocation5 + $0x40] sm:$0xff]  ;;  %345 = vmatprep.subr.mxu1 %v481_v0  ;;  %v69_v22 = vld [vmem:[#allocation5 + $0x38] sm:$0xff]  ;;  %v84_v24 = vld [vmem:[#allocation5 + $0xb0] sm:$0xff] }
  0x2d   :  { %298 = vmatpush3.msra.mxu0 %v74_v8  ;;  %346 = vmatpush3.msra.mxu1 %v186_v17  ;;  %v184_v23 = vld [vmem:[#allocation7 + $0x60] sm:$0xff]  ;;  %v68_v25 = vld [vmem:[#allocation5 + $0x30] sm:$0xff]  ;;  %v183_v26 = vld [vmem:[#allocation7 + $0x58] sm:$0xff] }
  0x2e   :  { %299 = vmatprep.subr.mxu0 %v89_v9  ;;  %347 = vmatprep.subr.mxu1 %v481_v0  ;;  %v83_v27 = vld [vmem:[#allocation5 + $0xa8] sm:$0xff]  ;;  %v182_v29 = vld [vmem:[#allocation7 + $0x50] sm:$0xff]  ;;  %v82_v30 = vld [vmem:[#allocation5 + $0xa0] sm:$0xff] }
  0x2f   :  { %300 = vmatpush3.msra.mxu0 %v73_v10  ;;  %348 = vmatpush3.msra.mxu1 %v185_v20  ;;  %v67_v28 = vld [vmem:[#allocation5 + $0x28] sm:$0xff]  ;;  %v66_v31 = vld [vmem:[#allocation5 + $0x20] sm:$0xff]  ;;  %v81_v33 = vld [vmem:[#allocation5 + $0x98] sm:$0xff] }
  0x30   :  { %301 = vmatprep.subr.mxu0 %v88_v11  ;;  %349 = vmatprep.subr.mxu1 %v481_v0  ;;  %v181_v32 = vld [vmem:[#allocation7 + $0x48] sm:$0xff]  ;;  %v65_v34 = vld [vmem:[#allocation5 + $0x18] sm:$0xff]  ;;  %v180_v35 = vld [vmem:[#allocation7 + $0x40] sm:$0xff] }
  0x31   :  { %302 = vmatpush3.msra.mxu0 %v72_v12  ;;  %350 = vmatpush3.msra.mxu1 %v184_v23  ;;  %v80_v36 = vld [vmem:[#allocation5 + $0x90] sm:$0xff]  ;;  %v179_v38 = vld [vmem:[#allocation7 + $0x38] sm:$0xff]  ;;  %v79_v39 = vld [vmem:[#allocation5 + $0x88] sm:$0xff] }
  0x32   :  { %303 = vmatprep.subr.mxu0 %v87_v13  ;;  %351 = vmatprep.subr.mxu1 %v481_v0  ;;  %v64_v37 = vld [vmem:[#allocation5 + $0x10] sm:$0xff]  ;;  %v63_v40 = vld [vmem:[#allocation5 + $0x8] sm:$0xff]  ;;  %v78_v42 = vld [vmem:[#allocation5 + $0x80] sm:$0xff] }
  0x33   :  { %304 = vmatpush3.msra.mxu0 %v71_v15  ;;  %352 = vmatpush3.msra.mxu1 %v183_v26  ;;  %v178_v41 = vld [vmem:[#allocation7 + $0x30] sm:$0xff]  ;;  %v62_v43 = vld [vmem:[#allocation5] sm:$0xff]  ;;  %v177_v44 = vld [vmem:[#allocation7 + $0x28] sm:$0xff] }
  0x34   :  { %305 = vmatprep.subr.mxu0 %v86_v18  ;;  %353 = vmatprep.subr.mxu1 %v481_v0  ;;  %v60_v45 = vld [vmem:[#allocation2] sm:$0xff]  ;;  %v176_v46 = vld [vmem:[#allocation7 + $0x20] sm:$0xff]  ;;  %v175_v47 = vld [vmem:[#allocation7 + $0x18] sm:$0xff] }
  0x35   :  { %306 = vmatpush3.msra.mxu0 %v70_v19  ;;  %354 = vmatpush3.msra.mxu1 %v182_v29  ;;  %v174_v48 = vld [vmem:[#allocation7 + $0x10] sm:$0xff]  ;;  %v173_v49 = vld [vmem:[#allocation7 + $0x8] sm:$0xff]  ;;  %v172_v50 = vld [vmem:[#allocation7] sm:$0xff] }
  0x36   :  { %307 = vmatprep.subr.mxu0 %v85_v21  ;;  %355 = vmatprep.subr.mxu1 %v481_v0  ;;  %v288_v52 = vld [vmem:[%s551_s2] ss:$0 sm:$0xff]  ;;  %s450_s2 = scalar_lea.vmem %s279_s12, 128 }
  0x37   :  { %308 = vmatpush3.msra.mxu0 %v69_v22  ;;  %356 = vmatpush3.msra.mxu1 %v181_v32  ;;  %v289_v57 = vld [vmem:[%s553_s4] ss:$0 sm:$0xff]  ;;  %p451_p1 = scmp.ne.s32.totalorder %s279_s12, %s450_s2  ;;  %p456_p3 = scmp.lt.s32.totalorder %s450_s2, %s450_s2 }
  0x38   :  { %309 = vmatprep.subr.mxu0 %v84_v24  ;;  %357 = vmatprep.subr.mxu1 %v481_v0 }
  0x39   :  { %310 = vmatpush3.msra.mxu0 %v68_v25  ;;  %358 = vmatpush3.msra.mxu1 %v180_v35  ;;  %p457_p4 = por %p456_p3, %p455_p2 }
  0x3a   :  { %311 = vmatprep.subr.mxu0 %v83_v27  ;;  %359 = vmatprep.subr.mxu1 %v481_v0 }
  0x3b   :  { %312 = vmatpush3.msra.mxu0 %v67_v28  ;;  %360 = vmatpush3.msra.mxu1 %v179_v38  ;;  %p458_p5 = pnand %p457_p4, %p451_p1 }
  0x3c   :  { %313 = vmatprep.subr.mxu0 %v82_v30  ;;  %361 = vmatprep.subr.mxu1 %v481_v0 }
  0x3d   :  { %314 = vmatpush3.msra.mxu0 %v66_v31  ;;  %362 = vmatpush3.msra.mxu1 %v178_v41 }
  0x3e   :  { %315 = vmatprep.subr.mxu0 %v81_v33  ;;  %363 = vmatprep.subr.mxu1 %v481_v0 }
  0x3f   :  { %316 = vmatpush3.msra.mxu0 %v65_v34  ;;  %364 = vmatpush3.msra.mxu1 %v177_v44 }
  0x40   :  { %317 = vmatprep.subr.mxu0 %v80_v36  ;;  %365 = vmatprep.subr.mxu1 %v481_v0 }
  0x41   :  { %318 = vmatpush3.msra.mxu0 %v64_v37  ;;  %366 = vmatpush3.msra.mxu1 %v176_v46 }
  0x42   :  { %319 = vmatprep.subr.mxu0 %v79_v39  ;;  %367 = vmatprep.subr.mxu1 %v481_v0 }
  0x43   :  { %320 = vmatpush3.msra.mxu0 %v63_v40  ;;  %368 = vmatpush3.msra.mxu1 %v175_v47 }
  0x44   :  { %321 = vmatprep.subr.mxu0 %v78_v42  ;;  %369 = vmatprep.subr.mxu1 %v481_v0 }
  0x45   :  { %322 = vmatpush3.msra.mxu0 %v62_v43  ;;  %370 = vmatpush3.msra.mxu1 %v174_v48 }
  0x46   :  { %166 = vmatmul.mubr.f32.vlgmr.msra.gmra.mxu0 %v60_v45  ;;  %371 = vmatprep.subr.mxu1 %v481_v0 }
  0x47   :  { %372 = vmatpush3.msra.mxu1 %v173_v49 }
  0x48   :  { %373 = vmatprep.subr.mxu1 %v481_v0 }
  0x49   :  { %374 = vmatpush3.msra.mxu1 %v172_v50 }
 0x106   :  { %v323_v51 = vpop.f32.mrf.mxu0 }
 0x108   :  { %v324_v53 = vpop.f32.mrf.mxu0 }
 0x109   :  { %v325_v54 = vadd.f32 %v324_v53, %v323_v51 }
 0x10b   :  { %v168_v55 = vadd.f32 %v325_v54, %v288_v52 }
 0x10d   :  { %v171_v56 = vmax.f32 %v168_v55, 0.0 }
 0x10f   :  { %376 = vmatmul.mubr.f32.vlgmr.msra.gmra.mxu1 %v171_v56 }
 0x1cf   :  { %v261_v58 = vpop.f32.mrf.mxu1 }
 0x1d0   :  { %v262_v59 = vadd.f32 %v289_v57, %v261_v58 }
 0x1d1   :  { %v377_v60 = vpop.f32.mrf.mxu1 }
 0x1d2   :  { %v290_v61 = vmul.f32 -1.442695, %v262_v59 }
 0x1d4   :  { %386 = vpow2.f32 %v290_v61 }
 0x1e1   :  { %v387_v62 = vpop.eup %386 }
 0x1e2   :  { %v268_v63 = vadd.f32 1.0, %v387_v62 }
 0x1e4   :  { %388 = vrcp.f32 %v268_v63 }
 0x1f1   :  { %v389_v0 = vpop.eup %388 }
 0x1f2   :  { %271 = vst [vmem:[#allocation8] sm:$0xff] %v389_v0 }
 0x1f3   :  { %461 = shalt.err (!%p458_p5)
}
 0x1f4   :  { %281 = dma.vmem_to_hbm [thread:$0]  %s279_s12, 128, %s554_s5, [#allocation4]  }
 0x1f5   :  { %474 = dma.done.wait [#allocation4], 128  }
 0x1f6   :  { %475 = vsyncadd [#allocation4], 4294967168 }
 0x1f7   :  { %285 = vsyncpa [#allocation3], 1 }
 0x1f8   :  { %286 = vsyncpa [#allocation6], 1 }
 0x1f9   :  { %287 = vsyncpa [#allocation4], 1 }

</bundles_post_ra>
